<compile_context>
chip_gen: v7x
topology: tpu7x:2x2x1
jax: 0.10.0
libtpu: 0.0.40
codegen_flags: <defaults>
</compile_context>

<pallas_src>
import jax
import jax.numpy as jnp
from jax.experimental import pallas as pl
from jax.experimental.pallas import tpu as pltpu

DIM = 32            # real feature width of the MLP
DIMP = 128          # lane-dense padded feature width (one full vreg lane axis)
BATCH = 8

# Row layout of the packed parameter buffer (all offsets sublane(8)-aligned).
ROW_W1 = 0                  # rows [0, 32)   : W1^T zero-padded to (32, 128)
ROW_B1 = ROW_W1 + DIM       # rows [32, 40)  : b1 in row 32, zero-padded
ROW_W2 = ROW_B1 + 8         # rows [40, 168) : W2^T zero-padded to (128, 128)
ROW_B2 = ROW_W2 + DIMP      # rows [168, 176): b2 in row 168, zero-padded
P_ROWS = ROW_B2 + 8         # 176 rows x 128 lanes x f32  ~= 90 KiB


def prepare_params(w1, b1, w2, b2):
    """One-time parameter packing (run at load time, NOT per forward call).

    w*: (out, in) like nn.Linear; b*: (out,).  Returns a single (176, 128)
    f32 buffer: transposed to (in, out) and zero-padded to 128 lanes so the
    kernel's intermediate activations and output tile are lane-dense.
    """
    f32 = jnp.float32
    w1t = jnp.zeros((DIM, DIMP), f32).at[:, :DIM].set(jnp.asarray(w1, f32).T)
    b1p = jnp.zeros((8, DIMP), f32).at[0, :DIM].set(jnp.asarray(b1, f32))
    w2t = jnp.zeros((DIMP, DIMP), f32).at[:DIM, :DIM].set(jnp.asarray(w2, f32).T)
    b2p = jnp.zeros((8, DIMP), f32).at[0, :DIM].set(jnp.asarray(b2, f32))
    return jnp.concatenate([w1t, b1p, w2t, b2p], axis=0)   # (176, 128)


def _mlp_kernel(x_ref, p_ref, o_ref):
    x = x_ref[...]                                   # (TB, DIM)
    w1 = p_ref[ROW_W1:ROW_W1 + DIM, :]               # (DIM, DIMP)  static, 8-aligned
    b1 = p_ref[ROW_B1:ROW_B1 + 1, :]                 # (1, DIMP)
    w2 = p_ref[ROW_W2:ROW_W2 + DIMP, :]              # (DIMP, DIMP)
    b2 = p_ref[ROW_B2:ROW_B2 + 1, :]                 # (1, DIMP)

    # Layer 1: Linear + ReLU (MXU matmul, f32 accumulate; lane-dense result).
    h = jnp.dot(x, w1, preferred_element_type=jnp.float32)
    h = jnp.maximum(h + b1, 0.0)
    # Layer 2: Linear + ReLU (padded rows/cols of w2 are zero -> exact result).
    h = jnp.dot(h, w2, preferred_element_type=jnp.float32)
    h = jnp.maximum(h + b2, 0.0)
    # SEPFunction.apply: identity in forward (autograd separator) — no-op.
    o_ref[...] = h.astype(o_ref.dtype)               # unmasked (TB, 128) store


def wrapped_dummy_model(x, packed_params):
    """x: (B, DIM) f32; packed_params: output of prepare_params()."""
    B, D = x.shape
    TB = B if B <= 256 else 256                      # batch tile
    grid = (pl.cdiv(B, TB),)

    cost = pl.CostEstimate(
        flops=2 * B * DIM * DIMP + 2 * B * DIMP * DIMP + 4 * B * DIMP,
        transcendentals=0,
        bytes_accessed=(B * D + P_ROWS * DIMP + B * DIMP) * 4,
    )

    out_padded = pl.pallas_call(
        _mlp_kernel,
        out_shape=jax.ShapeDtypeStruct((B, DIMP), x.dtype),
        grid=grid,
        in_specs=[
            pl.BlockSpec((TB, D), lambda i: (i, 0)),          # batch tile of x
            pl.BlockSpec((P_ROWS, DIMP), lambda i: (0, 0)),   # params resident
        ],
        out_specs=pl.BlockSpec((TB, DIMP), lambda i: (i, 0)),
        compiler_params=pltpu.CompilerParams(
            dimension_semantics=("parallel",)),               # megacore-friendly
        cost_estimate=cost,
    )(x, packed_params)

    # Recover the real 32 features from the lane-dense (B, 128) kernel output.
    # (If the surrounding model accepted padded features this slice would go away.)
    return out_padded[:, :DIM]


def reference_mlp(x, w1, b1, w2, b2):
    h = jnp.maximum(x @ w1.T + b1, 0.0)
    h = jnp.maximum(h @ w2.T + b2, 0.0)
    return h  # SEPFunction forward == identity


if __name__ == "__main__":
    key = jax.random.PRNGKey(0)
    kx, k1, k2, k3, k4 = jax.random.split(key, 5)

    x = jax.random.normal(kx, (BATCH, DIM), dtype=jnp.float32)
    # Deterministic parameter init (synthetic; not a checkpoint load).
    w1 = jax.random.normal(k1, (DIM, DIM), dtype=jnp.float32) * 0.1
    b1 = jax.random.normal(k2, (DIM,), dtype=jnp.float32) * 0.1
    w2 = jax.random.normal(k3, (DIM, DIM), dtype=jnp.float32) * 0.1
    b2 = jax.random.normal(k4, (DIM,), dtype=jnp.float32) * 0.1

    # One-time packing (outside the per-call path).
    params = jax.block_until_ready(prepare_params(w1, b1, w2, b2))

    out = wrapped_dummy_model(x, params)
    out = jax.block_until_ready(out)

    ref = reference_mlp(x, w1, b1, w2, b2)
    assert out.shape == (BATCH, DIM)
    assert jnp.allclose(out, ref, atol=1e-5, rtol=1e-5)

    print("KERNEL_OK")
</pallas_src>

<mosaic_0001>
module attributes {stable_mosaic.version = 11 : i64} {
  func.func @_mlp_kernel(%arg0: i32, %arg1: memref<8x32xf32, #tpu.memory_space<vmem>>, %arg2: memref<176x128xf32, #tpu.memory_space<vmem>>, %arg3: memref<8x128xf32, #tpu.memory_space<vmem>>) attributes {dimension_semantics = [#tpu.dimension_semantics<parallel>], iteration_bounds = array<i64: 1>, scalar_prefetch = 0 : i64, scratch_operands = 0 : i64, tpu.core_type = #tpu.core_type<tc>, window_params = [{transform_indices = @transform_0, window_bounds = array<i64: 8, 32>}, {pipeline_mode = #tpu.pipeline_mode<synchronous>, transform_indices = @transform_1, window_bounds = array<i64: 176, 128>}, {transform_indices = @transform_2, window_bounds = array<i64: 8, 128>}]} {
    %c0 = arith.constant 0 : index
    %c0_0 = arith.constant 0 : index
    %0 = vector.load %arg1[%c0, %c0_0] : memref<8x32xf32, #tpu.memory_space<vmem>>, vector<8x32xf32>
    %c0_1 = arith.constant 0 : index
    %c0_2 = arith.constant 0 : index
    %1 = vector.load %arg2[%c0_1, %c0_2] : memref<176x128xf32, #tpu.memory_space<vmem>>, vector<32x128xf32>
    %c32 = arith.constant 32 : index
    %c0_3 = arith.constant 0 : index
    %2 = vector.load %arg2[%c32, %c0_3] : memref<176x128xf32, #tpu.memory_space<vmem>>, vector<1x128xf32>
    %c40 = arith.constant 40 : index
    %c0_4 = arith.constant 0 : index
    %3 = vector.load %arg2[%c40, %c0_4] : memref<176x128xf32, #tpu.memory_space<vmem>>, vector<128x128xf32>
    %c168 = arith.constant 168 : index
    %c0_5 = arith.constant 0 : index
    %4 = vector.load %arg2[%c168, %c0_5] : memref<176x128xf32, #tpu.memory_space<vmem>>, vector<1x128xf32>
    %cst = arith.constant dense<0.000000e+00> : vector<8x128xf32>
    %5 = tpu.matmul %0, %1, %cst {dimension_numbers = #tpu.dot_dimension_numbers<[1], [0], [0], [1], [0, 0, 1, 1], [], []>} : vector<8x32xf32>, vector<32x128xf32>, vector<8x128xf32> -> vector<8x128xf32>
    %6 = vector.broadcast %2 : vector<1x128xf32> to vector<8x128xf32>
    %7 = arith.addf %5, %6 : vector<8x128xf32>
    %cst_6 = arith.constant 0.000000e+00 : f32
    %8 = vector.broadcast %cst_6 : f32 to vector<8x128xf32>
    %9 = arith.maximumf %7, %8 : vector<8x128xf32>
    %cst_7 = arith.constant dense<0.000000e+00> : vector<8x128xf32>
    %10 = tpu.matmul %9, %3, %cst_7 {dimension_numbers = #tpu.dot_dimension_numbers<[1], [0], [0], [1], [0, 0, 1, 1], [], []>} : vector<8x128xf32>, vector<128x128xf32>, vector<8x128xf32> -> vector<8x128xf32>
    %11 = vector.broadcast %4 : vector<1x128xf32> to vector<8x128xf32>
    %12 = arith.addf %10, %11 : vector<8x128xf32>
    %cst_8 = arith.constant 0.000000e+00 : f32
    %13 = vector.broadcast %cst_8 : f32 to vector<8x128xf32>
    %14 = arith.maximumf %12, %13 : vector<8x128xf32>
    %c0_9 = arith.constant 0 : index
    %c0_10 = arith.constant 0 : index
    %15 = vector.load %arg3[%c0_9, %c0_10] : memref<8x128xf32, #tpu.memory_space<vmem>>, vector<8x128xf32>
    tpu.vector_store %arg3[%c0_9, %c0_10], %14 {strides = array<i32>} : memref<8x128xf32, #tpu.memory_space<vmem>>, vector<8x128xf32>,
    return
  }
  func.func @transform_0(%arg0: i32) -> (i32, i32) {
    %c0_i32 = arith.constant 0 : i32
    %c0_i32_0 = arith.constant 0 : i32
    return %arg0, %c0_i32 : i32, i32
  }
  func.func @transform_1(%arg0: i32) -> (i32, i32) {
    %c0_i32 = arith.constant 0 : i32
    %c0_i32_0 = arith.constant 0 : i32
    %c0_i32_1 = arith.constant 0 : i32
    return %c0_i32, %c0_i32_0 : i32, i32
  }
  func.func @transform_2(%arg0: i32) -> (i32, i32) {
    %c0_i32 = arith.constant 0 : i32
    %c0_i32_0 = arith.constant 0 : i32
    return %arg0, %c0_i32 : i32, i32
  }
}

</mosaic_0001>

<bundles_post_ra>
// kernel: tpu_custom_call.1
= control target key start
LH: loop header
LB: loop body
LE: loop exit
PB: predicated region body
PF: predicated region fallthrough
CT: control target
= control target key end

     0   :  { %7 = vsyncpa [#allocation3], 0  ;;  %s479_s0 = inlined_call_operand.hbm [shape: f32[8,32], index: 0, kind: input, shape index: {}]   ;;  %s480_s1 = inlined_call_operand.hbm [shape: f32[176,128], index: 1, kind: input, shape index: {}]   ;;  %s481_s2 = inlined_call_operand.hbm [shape: f32[8,128], index: 2, kind: output, shape index: {}]  }
   0x1   :  { %8 = vsyncpa [#allocation6], 0 }
   0x2   :  { %9 = vsyncpa [#allocation4], 0  ;;  %s413_s9 = smov [#allocation2]   ;;  %s414_s11 = smov [#allocation5]  }
   0x3   :  { %s16_s10 = sshll.u32 %s413_s9, 4  ;;  %s25_s12 = sshll.u32 %s414_s11, 4  ;;  %s17_s10 = int_to_ptr.vmem [resolvable:$true] %s16_s10  ;;  %s436_s12 = int_to_ptr.vmem [resolvable:$true] %s25_s12 }
   0x4   :  { %s341_s15 = scalar_lea.hbm %s479_s0, 128 }
   0x5   :  { %p342_p0 = scmp.ne.s32.totalorder %s479_s0, %s341_s15  ;;  %p345_p1 = scmp.lt.u32.totalorder %s341_s15, %s479_s0 }
   0x7   :  { %p347_p2 = pnand %p345_p1, %p342_p0 }
   0x9   :  { %350 = shalt.err (!%p347_p2)
}
   0xa   :  { %s351_s20 = scalar_lea.vmem %s17_s10, 128  ;;  %p356_p4 = scmp.lt.s32.totalorder %s17_s10, %s17_s10 }
   0xb   :  { %p352_p3 = scmp.ne.s32.totalorder %s17_s10, %s351_s20  ;;  %p357_p5 = scmp.lt.s32.totalorder %s351_s20, %s351_s20 }
   0xd   :  { %p358_p6 = por %p357_p5, %p356_p4 }
   0xf   :  { %p359_p7 = pnand %p358_p6, %p352_p3 }
  0x11   :  { %362 = shalt.err (!%p359_p7)
}
  0x12   :  { %19 = dma.hbm_to_vmem [thread:$0]  %s479_s0, 128, %s17_s10, [#allocation3]  }
  0x13   :  { %s363_s25 = scalar_lea.hbm %s480_s1, 2816 }
  0x14   :  { %p364_p8 = scmp.ne.s32.totalorder %s480_s1, %s363_s25  ;;  %p367_p9 = scmp.lt.u32.totalorder %s363_s25, %s480_s1 }
  0x16   :  { %p369_p10 = pnand %p367_p9, %p364_p8 }
  0x18   :  { %372 = shalt.err (!%p369_p10)
}
  0x19   :  { %s373_s30 = scalar_lea.vmem %s436_s12, 2816  ;;  %p378_p12 = scmp.lt.s32.totalorder %s436_s12, %s436_s12 }
  0x1a   :  { %p374_p11 = scmp.ne.s32.totalorder %s436_s12, %s373_s30  ;;  %p379_p13 = scmp.lt.s32.totalorder %s373_s30, %s373_s30 }
  0x1c   :  { %p380_p0 = por %p379_p13, %p378_p12 }
  0x1e   :  { %p381_p1 = pnand %p380_p0, %p374_p11 }
  0x20   :  { %384 = shalt.err (!%p381_p1)
}
  0x21   :  { %s415_s0 = smov 128   ;;  %s416_s3 = smov 8  }
  0x22   :  { %31 = dma.hbm_to_vmem [thread:$0]  %s480_s1, 2816, %s436_s12, [#allocation6], %s415_s0, %s415_s0, %s416_s3  }
  0x23   :  { %407 = dma.done.wait [#allocation3], 128  }
  0x24   :  { %408 = vsyncadd [#allocation3], 4294967168 }
  0x25   :  { %409 = dma.done.wait [#allocation6], 2816  }
  0x26   :  { %410 = vsyncadd [#allocation6], 4294964480  ;;  %v417_v0 = vmov 0.0|0.0   ;;  %vm418_vm0 = vmmov 0   ;;  %v419_v1 = vmov 0.0   ;;  %v39_v2 = vld [vmem:[#allocation5] sm:$0xff] }
  0x27   :  { %303 = vmatprep.subr.bf16.mxu0 %v417_v0  ;;  %265 = vmatprep.mubr.msk.f32.mxu0 %vm418_vm0, %v419_v1  ;;  %v40_v3 = vld [vmem:[#allocation5 + $0x8] sm:$0xff]  ;;  %v41_v4 = vld [vmem:[#allocation5 + $0x10] sm:$0xff]  ;;  %v42_v6 = vld [vmem:[#allocation5 + $0x18] sm:$0xff]  ;;  %vm65_vm1 = vcmask 261120   ;;  %s420_s1 = smov [#allocation7]  }
  0x28   :  { %309 = vmatprep.subr.bf16.mxu1 %v417_v0  ;;  %300 = vmatprep.mubr.msk.f32.mxu1 %vm418_vm0, %v419_v1  ;;  %v304_v5 = vpack.c.bf16 %v40_v3, %v39_v2  ;;  %v44_v7 = vld [vmem:[#allocation5 + $0x28] sm:$0xff]  ;;  %v45_v8 = vld [vmem:[#allocation5 + $0x30] sm:$0xff]  ;;  %v46_v9 = vld [vmem:[#allocation5 + $0x38] sm:$0xff]  ;;  %v307_v11 = vpack.c.bf16 %v42_v6, %v41_v4  ;;  %s222_s6 = sshll.u32 %s420_s1, 4  ;;  %s223_s6 = int_to_ptr.vmem [resolvable:$true] %s222_s6 }
  0x29   :  { %v47_v10 = vld [vmem:[#allocation5 + $0x40] sm:$0xff]  ;;  %v310_v12 = vpack.c.bf16 %v45_v8, %v44_v7  ;;  %v48_v14 = vld [vmem:[#allocation5 + $0x48] sm:$0xff]  ;;  %v49_v15 = vld [vmem:[#allocation5 + $0x50] sm:$0xff]  ;;  %s385_s7 = scalar_lea.vmem %s223_s6, 128  ;;  %p390_p3 = scmp.lt.s32.totalorder %s223_s6, %s223_s6 }
  0x2a   :  { %305 = vmatpush3.bf16.msra.mxu0 %v304_v5  ;;  %v313_v13 = vpack.c.bf16 %v47_v10, %v46_v9  ;;  %v38_v16 = vld [vmem:[#allocation2] sm:$0xff]  ;;  %v316_v17 = vpack.c.bf16 %v49_v15, %v48_v14  ;;  %v51_v19 = vld [vmem:[#allocation5 + $0x60] sm:$0xff]  ;;  %v52_v21 = vld [vmem:[#allocation5 + $0x68] sm:$0xff]  ;;  %p386_p2 = scmp.ne.s32.totalorder %s223_s6, %s385_s7  ;;  %p391_p4 = scmp.lt.s32.totalorder %s385_s7, %s385_s7 }
  0x2b   :  { %306 = vmatprep.subr.bf16.mxu0 %v417_v0  ;;  %311 = vmatpush3.bf16.msra.mxu1 %v310_v12  ;;  %v50_v18 = vld [vmem:[#allocation5 + $0x58] sm:$0xff]  ;;  %v53_v22 = vld [vmem:[#allocation5 + $0x70] sm:$0xff]  ;;  %v55_v25 = vld [vmem:[#allocation5 + $0x80] sm:$0xff] }
  0x2c   :  { %312 = vmatprep.subr.bf16.mxu1 %v417_v0  ;;  %v319_v20 = vpack.c.bf16 %v51_v19, %v50_v18  ;;  %v322_v23 = vpack.c.bf16 %v53_v22, %v52_v21  ;;  %v54_v24 = vld [vmem:[#allocation5 + $0x78] sm:$0xff]  ;;  %v56_v27 = vld [vmem:[#allocation5 + $0x88] sm:$0xff]  ;;  %v57_v28 = vld [vmem:[#allocation5 + $0x90] sm:$0xff]  ;;  %p392_p5 = por %p391_p4, %p390_p3 }
  0x2d   :  { %v325_v26 = vpack.c.bf16 %v55_v25, %v54_v24  ;;  %v328_v29 = vpack.c.bf16 %v57_v28, %v56_v27  ;;  %v58_v30 = vld [vmem:[#allocation5 + $0x98] sm:$0xff]  ;;  %v59_v31 = vld [vmem:[#allocation5 + $0xa0] sm:$0xff]  ;;  %v234_v38 = vld [vmem:[#allocation5 + $0xa8] ss:$0 sm:$0xff] }
  0x2e   :  { %308 = vmatpush3.bf16.msra.mxu0 %v307_v11  ;;  %v331_v32 = vpack.c.bf16 %v59_v31, %v58_v30  ;;  %v232_v33 = vld [vmem:[#allocation5 + $0x20] ss:$0 sm:$0xff]  ;;  %p393_p6 = pnand %p392_p5, %p386_p2 }
  0x2f   :  { %314 = vmatpush3.bf16.msra.mxu1 %v313_v13 }
  0x30   :  { %315 = vmatprep.subr.bf16.mxu1 %v417_v0 }
  0x31   :  { %266 = vmatmul.mubr.msk.f32.vlgmr.msra.gmra.mrb[0].mxu0 %vm65_vm1, %v38_v16 }
  0x33   :  { %317 = vmatpush3.bf16.msra.mxu1 %v316_v17 }
  0x34   :  { %318 = vmatprep.subr.bf16.mxu1 %v417_v0 }
  0x37   :  { %320 = vmatpush3.bf16.msra.mxu1 %v319_v20 }
  0x38   :  { %321 = vmatprep.subr.bf16.mxu1 %v417_v0 }
  0x3b   :  { %323 = vmatpush3.bf16.msra.mxu1 %v322_v23 }
  0x3c   :  { %324 = vmatprep.subr.bf16.mxu1 %v417_v0 }
  0x3f   :  { %326 = vmatpush3.bf16.msra.mxu1 %v325_v26 }
  0x40   :  { %327 = vmatprep.subr.bf16.mxu1 %v417_v0 }
  0x43   :  { %329 = vmatpush3.bf16.msra.mxu1 %v328_v29 }
  0x44   :  { %330 = vmatprep.subr.bf16.mxu1 %v417_v0 }
  0x47   :  { %332 = vmatpush3.bf16.msra.mxu1 %v331_v32 }
 0x104   :  { %v135_v34 = vpop.f32.mrb[0].mxu0 }
 0x105   :  { %v136_v35 = vadd.f32 %v232_v33, %v135_v34  ;;  %v267_v36 = vpop.f32.mrb[1].mxu0 }
 0x107   :  { %v139_v37 = vmax.f32 %v136_v35, 0.0 }
 0x109   :  { %301 = vmatmul.mubr.f32.vlgmr.msra.gmra.mrb[0].mxu1 %v139_v37 }
 0x1dc   :  { %v210_v39 = vpop.f32.mrb[0].mxu1 }
 0x1dd   :  { %v211_v40 = vadd.f32 %v234_v38, %v210_v39  ;;  %v302_v41 = vpop.f32.mrb[1].mxu1 }
 0x1df   :  { %v214_v42 = vmax.f32 %v211_v40, 0.0 }
 0x1e1   :  { %215 = vst [vmem:[#allocation7] sm:$0xff] %v214_v42 }
 0x1e2   :  { %396 = shalt.err (!%p393_p6)
}
 0x1e3   :  { %s397_s10 = scalar_lea.hbm %s481_s2, 128 }
 0x1e4   :  { %p398_p7 = scmp.ne.s32.totalorder %s481_s2, %s397_s10  ;;  %p401_p8 = scmp.lt.u32.totalorder %s397_s10, %s481_s2 }
 0x1e6   :  { %p403_p9 = pnand %p401_p8, %p398_p7 }
 0x1e8   :  { %406 = shalt.err (!%p403_p9)
}
 0x1e9   :  { %225 = dma.vmem_to_hbm [thread:$0]  %s223_s6, 128, %s481_s2, [#allocation4]  }
 0x1ea   :  { %411 = dma.done.wait [#allocation4], 128  }
 0x1eb   :  { %412 = vsyncadd [#allocation4], 4294967168 }
 0x1ec   :  { %229 = vsyncpa [#allocation3], 1 }
 0x1ed   :  { %230 = vsyncpa [#allocation6], 1 }
 0x1ee   :  { %231 = vsyncpa [#allocation4], 1 }

</bundles_post_ra>
